<compile_context>
chip_gen: v7x
topology: tpu7x:2x2x1
jax: 0.10.0
libtpu: 0.0.40
codegen_flags: <defaults>
</compile_context>

<pallas_src>
import jax
import jax.numpy as jnp
from jax.experimental import pallas as pl
from jax.experimental.pallas import tpu as pltpu


def _conv_matmul_kernel(w_ref, p_ref, b_ref, o_ref):
    # w_ref: (O, C*KH*KW)   flattened weights
    # p_ref: (C*KH*KW, Np)  im2col patch matrix of the batch-summed input, lane-padded (Np % 128 == 0)
    # b_ref: (O, 1)         per-output-channel bias
    # o_ref: (O, Np)        lane-dense output slab
    acc = jnp.dot(
        w_ref[...],
        p_ref[...],
        preferred_element_type=jnp.float32,
        precision=jax.lax.Precision.HIGHEST,  # full-f32 MXU contraction (multi-pass)
    )
    o_ref[...] = (acc + b_ref[...]).astype(o_ref.dtype)


def my_conv2d(x, weight, bias):
    """Pallas implementation of MyConv2D.forward. x: (B, C, H, W) float32."""
    B, C, H, W = x.shape
    O, _, KH, KW = weight.shape
    Ho, Wo = H - KH + 1, W - KW + 1
    CKK = C * KH * KW
    P = Ho * Wo
    Np = ((P + 127) // 128) * 128  # lane-dense (multiple of 128) output width

    x = x.astype(jnp.float32)
    weight = weight.astype(jnp.float32)

    # Reference semantics: corr2d's `.sum()` reduces over batch too -> batch-invariant map.
    # Hoist the batch reduction once (was recomputed O times inside the old kernel).
    xsum = jnp.sum(x, axis=0)  # (C, H, W)

    # im2col (layout plumbing, done once in the wrapper): rows ordered (c, kh, kw) to match
    # weight.reshape(O, C*KH*KW); columns are flattened output pixels, zero-padded to Np lanes.
    patches = jnp.stack(
        [xsum[:, kh:kh + Ho, kw:kw + Wo] for kh in range(KH) for kw in range(KW)],
        axis=1,
    )                                   # (C, KH*KW, Ho, Wo)
    patches = patches.reshape(CKK, P)   # (C*KH*KW, Ho*Wo)
    patches = jnp.pad(patches, ((0, 0), (0, Np - P)))  # (C*KH*KW, Np)

    w_mat = weight.reshape(O, CKK)                      # (O, C*KH*KW)
    bias2d = bias.reshape(O, 1).astype(jnp.float32)     # (O, 1)

    out = pl.pallas_call(
        _conv_matmul_kernel,
        out_shape=jax.ShapeDtypeStruct((O, Np), jnp.float32),
        grid=(1,),  # single invocation: whole problem fits VMEM on v5e/v6e/v7x
        in_specs=[
            pl.BlockSpec((O, CKK), lambda i: (0, 0)),
            pl.BlockSpec((CKK, Np), lambda i: (0, 0)),
            pl.BlockSpec((O, 1), lambda i: (0, 0)),
        ],
        out_specs=pl.BlockSpec((O, Np), lambda i: (0, 0)),
        compiler_params=pltpu.CompilerParams(dimension_semantics=("arbitrary",)),
    )(w_mat, patches, bias2d)

    out = out[:, :P].reshape(O, Ho, Wo)
    # Reference output is batch-invariant; broadcast over the batch dim (NCHW output).
    return jnp.broadcast_to(out[None], (B, O, Ho, Wo))


def _reference(x, weight, bias):
    # Pure-JAX (VPU / exact f32) reference reproducing the PyTorch module's batch-summing
    # semantics with no matmul-precision ambiguity.
    B, C, H, W = x.shape
    O, _, KH, KW = weight.shape
    Ho, Wo = H - KH + 1, W - KW + 1
    xsum = jnp.sum(x.astype(jnp.float32), axis=0)  # (C, H, W)
    out = jnp.zeros((O, Ho, Wo), jnp.float32)
    for c in range(C):
        for kh in range(KH):
            for kw in range(KW):
                out = out + (
                    weight[:, c, kh, kw][:, None, None]
                    * xsum[c, kh:kh + Ho, kw:kw + Wo][None, :, :]
                )
    out = out + bias.reshape(O, 1, 1)
    return jnp.broadcast_to(out[None], (B, O, Ho, Wo))


if __name__ == "__main__":
    # Module params: MyConv2D(in_channels=4, out_channels=8, kernel_size=3)
    B, Cin, Cout, H, W, K = 2, 4, 8, 16, 16, 3

    key = jax.random.PRNGKey(0)
    kx, kw, kb = jax.random.split(key, 3)
    x = jax.random.normal(kx, (B, Cin, H, W), dtype=jnp.float32)
    weight = jax.random.normal(kw, (Cout, Cin, K, K), dtype=jnp.float32)   # torch.randn analogue
    bias = jax.random.normal(kb, (Cout, 1, 1), dtype=jnp.float32)          # torch.randn(O,1,1)

    y = my_conv2d(x, weight, bias)
    jax.block_until_ready(y)

    y_ref = _reference(x, weight, bias)
    assert y.shape == (B, Cout, H - K + 1, W - K + 1)
    assert jnp.allclose(y, y_ref, rtol=1e-3, atol=1e-3), "mismatch vs reference"

    print("KERNEL_OK")
</pallas_src>

<mosaic_0001>
module attributes {stable_mosaic.version = 11 : i64} {
  func.func @_conv_matmul_kernel(%arg0: i32, %arg1: memref<8x36xf32, #tpu.memory_space<vmem>>, %arg2: memref<36x256xf32, #tpu.memory_space<vmem>>, %arg3: memref<8x1xf32, #tpu.memory_space<vmem>>, %arg4: memref<8x256xf32, #tpu.memory_space<vmem>>) attributes {dimension_semantics = [#tpu.dimension_semantics<arbitrary>], iteration_bounds = array<i64: 1>, scalar_prefetch = 0 : i64, scratch_operands = 0 : i64, tpu.core_type = #tpu.core_type<tc>, window_params = [{pipeline_mode = #tpu.pipeline_mode<synchronous>, transform_indices = @transform_0, window_bounds = array<i64: 8, 36>}, {pipeline_mode = #tpu.pipeline_mode<synchronous>, transform_indices = @transform_1, window_bounds = array<i64: 36, 256>}, {pipeline_mode = #tpu.pipeline_mode<synchronous>, transform_indices = @transform_2, window_bounds = array<i64: 8, 1>}, {pipeline_mode = #tpu.pipeline_mode<synchronous>, transform_indices = @transform_3, window_bounds = array<i64: 8, 256>}]} {
    %c0 = arith.constant 0 : index
    %c0_0 = arith.constant 0 : index
    %0 = vector.load %arg1[%c0, %c0_0] : memref<8x36xf32, #tpu.memory_space<vmem>>, vector<8x36xf32>
    %c0_1 = arith.constant 0 : index
    %c0_2 = arith.constant 0 : index
    %1 = vector.load %arg2[%c0_1, %c0_2] : memref<36x256xf32, #tpu.memory_space<vmem>>, vector<36x256xf32>
    %cst = arith.constant dense<0.000000e+00> : vector<8x256xf32>
    %2 = tpu.matmul %0, %1, %cst {dimension_numbers = #tpu.dot_dimension_numbers<[1], [0], [0], [1], [0, 0, 1, 1], [], []>, precision = #tpu.contract_precision<fp32>} : vector<8x36xf32>, vector<36x256xf32>, vector<8x256xf32> -> vector<8x256xf32>
    %c0_3 = arith.constant 0 : index
    %c0_4 = arith.constant 0 : index
    %3 = vector.load %arg3[%c0_3, %c0_4] : memref<8x1xf32, #tpu.memory_space<vmem>>, vector<8x1xf32>
    %4 = vector.broadcast %3 : vector<8x1xf32> to vector<8x256xf32>
    %5 = arith.addf %2, %4 : vector<8x256xf32>
    %c0_5 = arith.constant 0 : index
    %c0_6 = arith.constant 0 : index
    %6 = vector.load %arg4[%c0_5, %c0_6] : memref<8x256xf32, #tpu.memory_space<vmem>>, vector<8x256xf32>
    tpu.vector_store %arg4[%c0_5, %c0_6], %5 {strides = array<i32>} : memref<8x256xf32, #tpu.memory_space<vmem>>, vector<8x256xf32>,
    return
  }
  func.func @transform_0(%arg0: i32) -> (i32, i32) {
    %c0_i32 = arith.constant 0 : i32
    %c0_i32_0 = arith.constant 0 : i32
    %c0_i32_1 = arith.constant 0 : i32
    return %c0_i32, %c0_i32_0 : i32, i32
  }
  func.func @transform_1(%arg0: i32) -> (i32, i32) {
    %c0_i32 = arith.constant 0 : i32
    %c0_i32_0 = arith.constant 0 : i32
    %c0_i32_1 = arith.constant 0 : i32
    return %c0_i32, %c0_i32_0 : i32, i32
  }
  func.func @transform_2(%arg0: i32) -> (i32, i32) {
    %c0_i32 = arith.constant 0 : i32
    %c0_i32_0 = arith.constant 0 : i32
    %c0_i32_1 = arith.constant 0 : i32
    return %c0_i32, %c0_i32_0 : i32, i32
  }
  func.func @transform_3(%arg0: i32) -> (i32, i32) {
    %c0_i32 = arith.constant 0 : i32
    %c0_i32_0 = arith.constant 0 : i32
    %c0_i32_1 = arith.constant 0 : i32
    return %c0_i32, %c0_i32_0 : i32, i32
  }
}

</mosaic_0001>

<bundles_post_ra>
// kernel: tpu_custom_call.1
= control target key start
LH: loop header
LB: loop body
LE: loop exit
PB: predicated region body
PF: predicated region fallthrough
CT: control target
= control target key end

     0   :  { %8 = vsyncpa [#allocation3], 0  ;;  %s911_s0 = inlined_call_operand.vmem [shape: f32[8,36], index: 0, kind: input, shape index: {}]   ;;  %s912_s1 = inlined_call_operand.hbm [shape: f32[36,256], index: 1, kind: input, shape index: {}]   ;;  %s913_s2 = inlined_call_operand.vmem [shape: f32[8,1], index: 2, kind: input, shape index: {}]   ;;  %s914_s3 = inlined_call_operand.hbm [shape: f32[8,256], index: 3, kind: output, shape index: {}]  }
   0x1   :  { %9 = vsyncpa [#allocation4], 0  ;;  %s758_s12 = smov [#allocation2]   ;;  %s710_s16 = scalar_lea.hbm %s912_s1, 1280 }
   0x2   :  { %s17_s13 = sshll.u32 %s758_s12, 4  ;;  %p711_p0 = scmp.ne.s32.totalorder %s912_s1, %s710_s16  ;;  %s18_s13 = int_to_ptr.vmem [resolvable:$true] %s17_s13 }
   0x3   :  { %p714_p1 = scmp.lt.u32.totalorder %s710_s16, %s912_s1 }
   0x5   :  { %p716_p2 = pnand %p714_p1, %p711_p0 }
   0x7   :  { %719 = shalt.err (!%p716_p2)
}
   0x8   :  { %s720_s21 = scalar_lea.vmem %s18_s13, 1280  ;;  %p725_p4 = scmp.lt.s32.totalorder %s18_s13, %s18_s13 }
   0x9   :  { %p721_p3 = scmp.ne.s32.totalorder %s18_s13, %s720_s21  ;;  %p726_p5 = scmp.lt.s32.totalorder %s720_s21, %s720_s21 }
   0xb   :  { %p727_p6 = por %p726_p5, %p725_p4 }
   0xd   :  { %p728_p7 = pnand %p727_p6, %p721_p3 }
   0xf   :  { %731 = shalt.err (!%p728_p7)
}
  0x10   :  { %s759_s22 = smov 256   ;;  %s760_s23 = smov 16  }
  0x11   :  { %23 = dma.hbm_to_vmem [thread:$0]  %s912_s1, 1280, %s18_s13, [#allocation3], %s759_s22, %s759_s22, %s760_s23  }
  0x12   :  { %754 = dma.done.wait [#allocation3], 1280  }
  0x13   :  { %755 = vsyncadd [#allocation3], 4294966016  ;;  %v761_v0 = vmov 0.0   ;;  %v762_v1 = vmov 0   ;;  %v31_v2 = vld [vmem:[#allocation2 + $0x8] sm:$0xff]  ;;  %v33_v3 = vld [vmem:[#allocation2 + $0x18] sm:$0xff] }
  0x14   :  { %131 = vmatprep.mubr.f32.mxu1 %v761_v0  ;;  %432 = vmatprep.mubr.f32.mxu0 %v761_v0  ;;  %v30_v4 = vld [vmem:[#allocation2] sm:$0xff]  ;;  %vm50_vm0 = vcmask 1043456   ;;  %v57_v5 = vand.u32 4294901760, %v31_v2  ;;  %v61_v6 = vand.u32 4294901760, %v33_v3  ;;  %v32_v7 = vld [vmem:[#allocation2 + $0x10] sm:$0xff]  ;;  %v35_v9 = vld [vmem:[#allocation2 + $0x28] sm:$0xff] }
  0x15   :  { %709 = vset.pattern.permute.xlu0 %v762_v1  ;;  %v59_v8 = vand.u32 4294901760, %v30_v4  ;;  %v37_v10 = vld [vmem:[#allocation2 + $0x38] sm:$0xff]  ;;  %v63_v11 = vand.u32 4294901760, %v32_v7  ;;  %v65_v12 = vand.u32 4294901760, %v35_v9  ;;  %v34_v14 = vld [vmem:[#allocation2 + $0x20] sm:$0xff]  ;;  %v36_v15 = vld [vmem:[#allocation2 + $0x30] sm:$0xff] }
  0x16   :  { %v69_v13 = vand.u32 4294901760, %v37_v10  ;;  %vm46_vm1 = vcmask 293888   ;;  %v798_v16 = vpack.c.bf16 %v61_v6, %v57_v5  ;;  %v800_v17 = vsub.f32 %v31_v2, %v57_v5  ;;  %v39_v20 = vld [vmem:[#allocation2 + $0x48] sm:$0xf]  ;;  %v38_v21 = vld [vmem:[#allocation2 + $0x40] sm:$0xf] }
  0x17   :  { %v802_v18 = vsub.f32 %v33_v3, %v61_v6  ;;  %v804_v19 = vsub.f32 %v30_v4, %v59_v8  ;;  %v40_v22 = vld [vmem:[%s913_s2] sm:$0xff]  ;;  %v809_v23 = vpack.c.bf16 %v63_v11, %v59_v8  ;;  %v811_v24 = vsub.f32 %v32_v7, %v63_v11 }
  0x18   :  { %v813_v25 = vpack.c.bf16 %v69_v13, %v65_v12  ;;  %v815_v26 = vsub.f32 %v35_v9, %v65_v12  ;;  %43 = vperm.xlu0 %709, %v40_v22   ;;  %644 = vmatprep.subr.bf16.mxu1 %v798_v16  ;;  %v819_v27 = vsub.f32 %v37_v10, %v69_v13  ;;  %v67_v28 = vand.u32 4294901760, %v34_v14  ;;  %v29_v31 = vld [vmem:[%s911_s0] sm:$0xff]  ;;  %s763_s0 = smov [#allocation5]  }
  0x19   :  { %668 = vmatprep.subr.bf16.mxu0 %v798_v16  ;;  %v71_v29 = vand.u32 4294901760, %v36_v15  ;;  %v55_v30 = vsel %vm50_vm0, %v39_v20, 0  ;;  %646 = vmatpush1.bf16.msra.mxu1 %v809_v23  ;;  %v52_v33 = vsel %vm50_vm0, %v38_v21, 0  ;;  %v145_v34 = vand.u32 4294901760, %v800_v17  ;;  %s634_s28 = sshll.u32 %s763_s0, 4  ;;  %s635_s28 = int_to_ptr.vmem [resolvable:$true] %s634_s28 }
  0x1a   :  { %670 = vmatpush1.bf16.msra.mxu0 %v809_v23  ;;  %v827_v32 = vand.u32 4294901760, %v55_v30  ;;  %v157_v35 = vand.u32 4294901760, %v802_v18  ;;  %648 = vmatprep.subr.bf16.mxu1 %v813_v25  ;;  %v836_v37 = vsub.f32 %v34_v14, %v67_v28  ;;  %v840_v39 = vand.u32 4294901760, %v52_v33  ;;  %s732_s29 = scalar_lea.vmem %s635_s28, 256  ;;  %p737_p9 = scmp.lt.s32.totalorder %s635_s28, %s635_s28 }
  0x1b   :  { %672 = vmatprep.subr.bf16.mxu0 %v813_v25  ;;  %v834_v36 = vpack.c.bf16 %v71_v29, %v67_v28  ;;  %v838_v38 = vsub.f32 %v36_v15, %v71_v29  ;;  %v146_v40 = vsub.f32 %v800_v17, %v145_v34  ;;  %v48_v43 = vsel %vm46_vm1, %v29_v31, 0  ;;  %p733_p8 = scmp.ne.s32.totalorder %s635_s28, %s732_s29  ;;  %p738_p10 = scmp.lt.s32.totalorder %s732_s29, %s732_s29 }
  0x1c   :  { %v158_v41 = vsub.f32 %v802_v18, %v157_v35  ;;  %v675_v42 = vpack.c.bf16 %v157_v35, %v145_v34  ;;  %v846_v44 = vsub.f32 %v52_v33, %v840_v39  ;;  %v848_v45 = vand.u32 4294901760, %v48_v43 }
  0x1d   :  { %v151_v46 = vand.u32 4294901760, %v804_v19  ;;  %v163_v47 = vand.u32 4294901760, %v811_v24  ;;  %650 = vmatpush1.bf16.msra.mxu1 %v834_v36  ;;  %v147_v48 = vand.u32 4294901760, %v146_v40  ;;  %v169_v50 = vand.u32 4294901760, %v815_v26  ;;  %p739_p11 = por %p738_p10, %p737_p9 }
  0x1e   :  { %674 = vmatpush1.bf16.msra.mxu0 %v834_v36  ;;  %v159_v49 = vand.u32 4294901760, %v158_v41  ;;  %v181_v51 = vand.u32 4294901760, %v819_v27  ;;  %74 = vmatprep.subr.mxu1 %v827_v32  ;;  %v859_v52 = vsub.f32 %v48_v43, %v848_v45  ;;  %v175_v55 = vand.u32 4294901760, %v836_v37 }
  0x1f   :  { %375 = vmatprep.subr.mxu0 %v827_v32  ;;  %v152_v53 = vsub.f32 %v804_v19, %v151_v46  ;;  %v164_v54 = vsub.f32 %v811_v24, %v163_v47  ;;  %v677_v57 = vpack.c.bf16 %v163_v47, %v151_v46  ;;  %v170_v58 = vsub.f32 %v815_v26, %v169_v50  ;;  %p740_p12 = pnand %p739_p11, %p733_p8 }
  0x20   :  { %v651_v56 = vpack.c.bf16 %v159_v49, %v147_v48  ;;  %v182_v59 = vsub.f32 %v819_v27, %v181_v51  ;;  %v134_v60 = vand.u32 4294901760, %v859_v52  ;;  %v679_v63 = vpack.c.bf16 %v181_v51, %v169_v50 }
  0x21   :  { %v153_v61 = vand.u32 4294901760, %v152_v53  ;;  %v165_v62 = vand.u32 4294901760, %v164_v54  ;;  %76 = vmatpush1.msra.mxu1 %v840_v39  ;;  %v171_v1 = vand.u32 4294901760, %v170_v58  ;;  %v176_v3 = vsub.f32 %v836_v37, %v175_v55 }
  0x22   :  { %377 = vmatpush1.msra.mxu0 %v840_v39  ;;  %v183_v2 = vand.u32 4294901760, %v182_v59  ;;  %v187_v4 = vand.u32 4294901760, %v838_v38  ;;  %652 = vmatprep.subr.bf16.mxu1 %v651_v56  ;;  %v135_v5 = vsub.f32 %v859_v52, %v134_v60  ;;  %v192_v6 = vsub.f32 %v55_v30, %v827_v32 }
  0x23   :  { %676 = vmatprep.subr.bf16.mxu0 %v675_v42  ;;  %v653_v7 = vpack.c.bf16 %v165_v62, %v153_v61  ;;  %436 = vmatmul.mubr.f32.vlgmr.msra.gmra.mrb[0].mxu0 %v134_v60  ;;  %v177_v8 = vand.u32 4294901760, %v176_v3  ;;  %v199_v10 = vand.u32 4294901760, %v846_v44  ;;  %v659_v30 = vpack.c.bf16 %v802_v18, %v800_v17 }
  0x24   :  { %v188_v9 = vsub.f32 %v838_v38, %v187_v4  ;;  %v136_v11 = vand.u32 4294901760, %v135_v5  ;;  %678 = vmatpush1.bf16.msra.mxu0 %v677_v57  ;;  %v655_v12 = vpack.c.bf16 %v183_v2, %v171_v1  ;;  %v681_v13 = vpack.c.bf16 %v187_v4, %v175_v55  ;;  %536 = vmatprep.mubr.f32.mxu0 %v761_v0 }
  0x25   :  { %v193_v14 = vand.u32 4294901760, %v192_v6  ;;  %680 = vmatprep.subr.bf16.mxu0 %v679_v63  ;;  %v200_v22 = vsub.f32 %v846_v44, %v199_v10  ;;  %v661_v31 = vpack.c.bf16 %v811_v24, %v804_v19  ;;  %v663_v33 = vpack.c.bf16 %v819_v27, %v815_v26 }
  0x26   :  { %v189_v15 = vand.u32 4294901760, %v188_v9  ;;  %137 = vmatmul.mubr.f32.vlgmr.msra.gmra.mrb[0].mxu1 %v136_v11 }
  0x27   :  { %v194_v20 = vsub.f32 %v192_v6, %v193_v14  ;;  %654 = vmatpush1.bf16.msra.mxu1 %v653_v7  ;;  %257 = vmatprep.mubr.f32.mxu1 %v761_v0  ;;  %v201_v29 = vand.u32 4294901760, %v200_v22 }
  0x28   :  { %v657_v21 = vpack.c.bf16 %v189_v15, %v177_v8  ;;  %656 = vmatprep.subr.bf16.mxu1 %v655_v12  ;;  %682 = vmatpush1.bf16.msra.mxu0 %v681_v13 }
  0x29   :  { %v195_v28 = vand.u32 4294901760, %v194_v20  ;;  %477 = vmatprep.subr.mxu0 %v193_v14 }
  0x2b   :  { %658 = vmatpush1.bf16.msra.mxu1 %v657_v21 }
  0x2c   :  { %196 = vmatprep.subr.mxu1 %v195_v28  ;;  %481 = vmatpush1.msra.mxu0 %v199_v10 }
  0x2d   :  { %684 = vmatprep.subr.bf16.mxu0 %v798_v16  ;;  %538 = vmatmul.mubr.f32.vlgmr.msra.gmra.mrb[0].mxu0 %v848_v45  ;;  %v665_v16 = vpack.c.bf16 %v838_v38, %v836_v37 }
  0x2e   :  { %686 = vmatpush1.bf16.msra.mxu0 %v809_v23  ;;  %618 = vmatprep.mubr.f32.mxu0 %v761_v0 }
  0x2f   :  { %202 = vmatpush1.msra.mxu1 %v201_v29  ;;  %688 = vmatprep.subr.bf16.mxu0 %v813_v25 }
  0x30   :  { %660 = vmatprep.subr.bf16.mxu1 %v659_v30  ;;  %259 = vmatmul.mubr.f32.vlgmr.msra.gmra.mrb[0].mxu1 %v848_v45 }
  0x31   :  { %662 = vmatpush1.bf16.msra.mxu1 %v661_v31  ;;  %349 = vmatprep.mubr.f32.mxu1 %v761_v0 }
  0x32   :  { %664 = vmatprep.subr.bf16.mxu1 %v663_v33  ;;  %690 = vmatpush1.bf16.msra.mxu0 %v834_v36 }
  0x33   :  { %561 = vmatprep.subr.mxu0 %v827_v32 }
  0x35   :  { %666 = vmatpush1.bf16.msra.mxu1 %v665_v16 }
  0x36   :  { %291 = vmatprep.subr.mxu1 %v192_v6  ;;  %563 = vmatpush1.msra.mxu0 %v840_v39 }
  0x37   :  { %620 = vmatmul.mubr.f32.vlgmr.msra.gmra.mrb[0].mxu0 %v848_v45 }
  0x39   :  { %294 = vmatpush1.msra.mxu1 %v846_v44 }
  0x3a   :  { %352 = vmatmul.mubr.f32.vlgmr.msra.gmra.mrb[0].mxu1 %v859_v52 }
  0x97   :  { %v44_v18 = vpop.permute.xlu0 %43 }
 0x10a   :  { %v621_v17 = vpop.f32.mrb[0].mxu0 }
 0x10b   :  { %v623_v19 = vpop.f32.mrb[1].mxu0 }
 0x10d   :  { %v353_v23 = vpop.f32.mrb[0].mxu1 }
 0x10e   :  { %v691_v0 = vadd.f32 %v353_v23, %v44_v18  ;;  %v355_v24 = vpop.f32.mrb[1].mxu1 }
 0x10f   :  { %v693_v25 = vadd.f32 %v355_v24, %v44_v18 }
 0x110   :  { %v692_v26 = vadd.f32 %v691_v0, %v621_v17 }
 0x111   :  { %v694_v27 = vadd.f32 %v693_v25, %v623_v19 }
 0x112   :  { %626 = vst [vmem:[#allocation5] sm:$0xff] %v692_v26 }
 0x113   :  { %627 = vst [vmem:[#allocation5 + $0x8] sm:$0xff] %v694_v27 }
 0x114   :  { %743 = shalt.err (!%p740_p12)
}
 0x115   :  { %s744_s5 = scalar_lea.hbm %s914_s3, 256 }
 0x116   :  { %p745_p13 = scmp.ne.s32.totalorder %s914_s3, %s744_s5  ;;  %p748_p0 = scmp.lt.u32.totalorder %s744_s5, %s914_s3 }
 0x118   :  { %p750_p1 = pnand %p748_p0, %p745_p13 }
 0x11a   :  { %753 = shalt.err (!%p750_p1)
}
 0x11b   :  { %637 = dma.vmem_to_hbm [thread:$0]  %s635_s28, 256, %s914_s3, [#allocation4]  }
 0x11c   :  { %756 = dma.done.wait [#allocation4], 256  }
 0x11d   :  { %757 = vsyncadd [#allocation4], 4294967040 }
 0x11e   :  { %641 = vsyncpa [#allocation3], 1 }
 0x11f   :  { %642 = vsyncpa [#allocation4], 1 }

</bundles_post_ra>
